<compile_context>
chip_gen: v7x
topology: tpu7x:2x2x1
jax: 0.10.0
libtpu: 0.0.40
codegen_flags: <defaults>
</compile_context>

<pallas_src>
import jax
import jax.numpy as jnp
from jax.experimental import pallas as pl
from jax.experimental.pallas import tpu as pltpu


def _round_up(x, m):
    return (x + m - 1) // m * m


def _round_down(x, m):
    return (x // m) * m


def decoder_kernel(x_ref, w_ref, b_ref, o_ref):
    # x_ref : (C, TL)  lane-dense slab (streamed)
    # w_ref : (H, C)   resident weight
    # b_ref : (H, 1)   resident bias (f32)
    # o_ref : (H, TL)  lane-dense output slab
    y = jnp.dot(w_ref[...], x_ref[...], preferred_element_type=jnp.float32)  # MXU, f32 acc
    o_ref[...] = (y + b_ref[...]).astype(o_ref.dtype)                        # bias add in f32


def _vmem_budget_bytes():
    """Scoped-VMEM budget with headroom; safe on v5e/v6e (128 MiB) and v7x (64 MiB)."""
    try:
        cap = int(pltpu.get_tpu_info().vmem_capacity_bytes)
    except Exception:
        cap = 64 * 1024 * 1024  # v7x worst case
    return int(cap * 0.70)


def _adaptive_lane_tile(C, H, x_bytes, o_bytes, w_bytes, budget):
    """Largest lane tile (multiple of 128) whose double-buffered x/out blocks + resident
    weight/bias fit the VMEM budget."""
    resident = H * C * w_bytes + _round_up(H, 8) * 128 * 4      # weight + padded bias tile
    per_lane = 2 * (C * x_bytes + H * o_bytes)                   # double-buffered x/out
    avail = max(budget - resident, 0)
    tl = _round_down(avail // max(per_lane, 1), 128)
    return int(min(max(tl, 128), 32768))


def decoder_forward(x, weight, bias, *, out_dtype=jnp.float32, lane_tile=None):
    """Conv1d(kernel_size=1) forward.

    x: (N, C, L); weight: (H, C, 1) (PyTorch conv layout); bias: (H,). Returns (N, H, L).
    """
    N, C, L = x.shape
    H = weight.shape[0]

    budget = _vmem_budget_bytes()
    x_bytes = jnp.dtype(x.dtype).itemsize
    o_bytes = jnp.dtype(out_dtype).itemsize

    # Weight residency gate (matters on v7x's 64 MiB VMEM): shrink to bf16 if an
    # x-dtype weight would eat most of the budget. MXU accumulation stays f32.
    w_dtype = x.dtype
    if H * C * jnp.dtype(w_dtype).itemsize > budget // 2:
        # TODO(synk): for extreme H*C, add a C (reduction) grid axis with an f32 VMEM
        # accumulator (init/finalize via pl.when, axis marked "arbitrary").
        w_dtype = jnp.bfloat16
    w_bytes = jnp.dtype(w_dtype).itemsize

    w2d = weight.reshape(H, C).astype(w_dtype)      # tiny one-time casts (resident operands)
    b2d = bias.reshape(H, 1).astype(jnp.float32)

    # Sanitize / choose lane tile (always a multiple of 128 unless it equals the full dim).
    if lane_tile is None:
        tl_cap = _adaptive_lane_tile(C, H, x_bytes, o_bytes, w_bytes, budget)
    else:
        tl_cap = max(128, _round_down(int(lane_tile), 128))

    if L >= 128:
        # ---- Native-layout path: 2D grid over (batch, L tiles); zero wrapper layout ops.
        tl = min(tl_cap, _round_down(L, 128))
        num_l = pl.cdiv(L, tl)
        if N * num_l < 2 and tl > 128:
            # Guarantee >= 2 parallel grid steps so both v7x TensorCores get work.
            tl = max(128, _round_down(pl.cdiv(tl, 2), 128))
            num_l = pl.cdiv(L, tl)

        cost = pl.CostEstimate(
            flops=2 * H * C * N * L,
            bytes_accessed=N * C * L * x_bytes + H * C * w_bytes + N * H * L * o_bytes,
            transcendentals=0,
        )
        return pl.pallas_call(
            decoder_kernel,
            out_shape=jax.ShapeDtypeStruct((N, H, L), out_dtype),
            grid_spec=pl.GridSpec(
                grid=(N, num_l),
                in_specs=[
                    pl.BlockSpec((pl.Squeezed(), C, tl), lambda n, i: (n, 0, i)),  # x slab
                    pl.BlockSpec((H, C), lambda n, i: (0, 0)),                     # resident W
                    pl.BlockSpec((H, 1), lambda n, i: (0, 0)),                     # resident b
                ],
                out_specs=pl.BlockSpec((pl.Squeezed(), H, tl), lambda n, i: (n, 0, i)),
            ),
            compiler_params=pltpu.CompilerParams(
                dimension_semantics=("parallel", "parallel"),
                vmem_limit_bytes=budget,
            ),
            cost_estimate=cost,
        )(x, w2d, b2d)

    # ---- Small-L fallback (L < 128): fuse batch into the lane axis so output stores stay
    # lane-dense. Wrapper reshapes only touch tiny arrays here.
    M = N * L
    x2d = jnp.transpose(x, (1, 0, 2)).reshape(C, M)
    if M < 128:
        tl = M                                   # full-dim block satisfies the (8,128) rule
    else:
        tl = min(tl_cap, _round_down(M, 128))
    num_tiles = pl.cdiv(M, tl)

    cost = pl.CostEstimate(
        flops=2 * H * C * M,
        bytes_accessed=C * M * x_bytes + H * C * w_bytes + H * M * o_bytes,
        transcendentals=0,
    )
    out2d = pl.pallas_call(
        decoder_kernel,
        out_shape=jax.ShapeDtypeStruct((H, M), out_dtype),
        grid_spec=pl.GridSpec(
            grid=(num_tiles,),
            in_specs=[
                pl.BlockSpec((C, tl), lambda i: (0, i)),
                pl.BlockSpec((H, C), lambda i: (0, 0)),
                pl.BlockSpec((H, 1), lambda i: (0, 0)),
            ],
            out_specs=pl.BlockSpec((H, tl), lambda i: (0, i)),
        ),
        compiler_params=pltpu.CompilerParams(
            dimension_semantics=("parallel",),
            vmem_limit_bytes=budget,
        ),
        cost_estimate=cost,
    )(x2d, w2d, b2d)
    return jnp.transpose(out2d.reshape(H, N, L), (1, 0, 2))


def init_decoder_params(key, input_size, hidden_size):
    """Deterministic init mimicking PyTorch Conv1d default (uniform +-1/sqrt(fan_in))."""
    kw, kb = jax.random.split(key)
    bound = 1.0 / jnp.sqrt(input_size)  # kernel_size = 1
    weight = jax.random.uniform(
        kw, (hidden_size, input_size, 1), jnp.float32, minval=-bound, maxval=bound
    )
    bias = jax.random.uniform(
        kb, (hidden_size,), jnp.float32, minval=-bound, maxval=bound
    )
    return weight, bias


def _reference(x, weight, bias):
    H, C = weight.shape[0], weight.shape[1]
    return jnp.einsum("hc,ncl->nhl", weight.reshape(H, C), x) + bias.reshape(1, H, 1)


if __name__ == "__main__":
    key = jax.random.PRNGKey(0)
    k_x, k_p, k_x2, k_x3 = jax.random.split(key, 4)

    batch, input_size, hidden_size, seq_len = 2, 4, 32, 16
    weight, bias = init_decoder_params(k_p, input_size, hidden_size)

    # 1) Small-L fallback path (L < 128, batch fused into lanes).
    x = jax.random.normal(k_x, (batch, input_size, seq_len), jnp.float32)
    out = jax.block_until_ready(decoder_forward(x, weight, bias))
    ref = _reference(x, weight, bias)
    assert out.shape == (batch, hidden_size, seq_len)
    assert jnp.allclose(out, ref, atol=1e-5, rtol=1e-5)

    # 2) Native-layout 2D-grid path with a ragged L tile (L=300 -> tl=256, partial last block).
    seq_len2 = 300
    x2 = jax.random.normal(k_x2, (batch, input_size, seq_len2), jnp.float32)
    out2 = jax.block_until_ready(decoder_forward(x2, weight, bias))
    ref2 = _reference(x2, weight, bias)
    assert out2.shape == (batch, hidden_size, seq_len2)
    assert jnp.allclose(out2, ref2, atol=1e-5, rtol=1e-5)

    # 3) N=1 case: exercises the split that guarantees >= 2 parallel grid steps (v7x 2 TCs).
    x3 = jax.random.normal(k_x3, (1, input_size, 256), jnp.float32)
    out3 = jax.block_until_ready(decoder_forward(x3, weight, bias))
    ref3 = _reference(x3, weight, bias)
    assert out3.shape == (1, hidden_size, 256)
    assert jnp.allclose(out3, ref3, atol=1e-5, rtol=1e-5)

    print("KERNEL_OK")
</pallas_src>

<mosaic_0001>
module attributes {stable_mosaic.version = 11 : i64} {
  func.func @decoder_kernel(%arg0: i32, %arg1: memref<4x32xf32, #tpu.memory_space<vmem>>, %arg2: memref<32x4xf32, #tpu.memory_space<vmem>>, %arg3: memref<32x1xf32, #tpu.memory_space<vmem>>, %arg4: memref<32x32xf32, #tpu.memory_space<vmem>>) attributes {dimension_semantics = [#tpu.dimension_semantics<parallel>], iteration_bounds = array<i64: 1>, scalar_prefetch = 0 : i64, scratch_operands = 0 : i64, tpu.core_type = #tpu.core_type<tc>, window_params = [{transform_indices = @transform_0, window_bounds = array<i64: 4, 32>}, {pipeline_mode = #tpu.pipeline_mode<synchronous>, transform_indices = @transform_1, window_bounds = array<i64: 32, 4>}, {pipeline_mode = #tpu.pipeline_mode<synchronous>, transform_indices = @transform_2, window_bounds = array<i64: 32, 1>}, {transform_indices = @transform_3, window_bounds = array<i64: 32, 32>}]} {
    %c0 = arith.constant 0 : index
    %c0_0 = arith.constant 0 : index
    %0 = vector.load %arg2[%c0, %c0_0] : memref<32x4xf32, #tpu.memory_space<vmem>>, vector<32x4xf32>
    %c0_1 = arith.constant 0 : index
    %c0_2 = arith.constant 0 : index
    %1 = vector.load %arg1[%c0_1, %c0_2] : memref<4x32xf32, #tpu.memory_space<vmem>>, vector<4x32xf32>
    %cst = arith.constant dense<0.000000e+00> : vector<32x32xf32>
    %2 = tpu.matmul %0, %1, %cst {dimension_numbers = #tpu.dot_dimension_numbers<[1], [0], [0], [1], [0, 0, 1, 1], [], []>} : vector<32x4xf32>, vector<4x32xf32>, vector<32x32xf32> -> vector<32x32xf32>
    %c0_3 = arith.constant 0 : index
    %c0_4 = arith.constant 0 : index
    %3 = vector.load %arg3[%c0_3, %c0_4] : memref<32x1xf32, #tpu.memory_space<vmem>>, vector<32x1xf32>
    %4 = vector.broadcast %3 : vector<32x1xf32> to vector<32x32xf32>
    %5 = arith.addf %2, %4 : vector<32x32xf32>
    %c0_5 = arith.constant 0 : index
    %c0_6 = arith.constant 0 : index
    %6 = vector.load %arg4[%c0_5, %c0_6] : memref<32x32xf32, #tpu.memory_space<vmem>>, vector<32x32xf32>
    tpu.vector_store %arg4[%c0_5, %c0_6], %5 {strides = array<i32>} : memref<32x32xf32, #tpu.memory_space<vmem>>, vector<32x32xf32>,
    return
  }
  func.func @transform_0(%arg0: i32) -> (i32, i32) {
    %c0_i32 = arith.constant 0 : i32
    %c0_i32_0 = arith.constant 0 : i32
    return %c0_i32, %arg0 : i32, i32
  }
  func.func @transform_1(%arg0: i32) -> (i32, i32) {
    %c0_i32 = arith.constant 0 : i32
    %c0_i32_0 = arith.constant 0 : i32
    %c0_i32_1 = arith.constant 0 : i32
    return %c0_i32, %c0_i32_0 : i32, i32
  }
  func.func @transform_2(%arg0: i32) -> (i32, i32) {
    %c0_i32 = arith.constant 0 : i32
    %c0_i32_0 = arith.constant 0 : i32
    %c0_i32_1 = arith.constant 0 : i32
    return %c0_i32, %c0_i32_0 : i32, i32
  }
  func.func @transform_3(%arg0: i32) -> (i32, i32) {
    %c0_i32 = arith.constant 0 : i32
    %c0_i32_0 = arith.constant 0 : i32
    return %c0_i32, %arg0 : i32, i32
  }
}

</mosaic_0001>

<bundles_post_ra>
// kernel: tpu_custom_call.1
= control target key start
LH: loop header
LB: loop body
LE: loop exit
PB: predicated region body
PF: predicated region fallthrough
CT: control target
= control target key end

     0   :  { %vm57_vm0 = vcmask 1043456   ;;  %vm44_vm1 = vcmask 31744   ;;  %s280_s0 = inlined_call_operand.vmem [shape: f32[4,32], index: 0, kind: input, shape index: {}]   ;;  %s281_s1 = inlined_call_operand.vmem [shape: f32[32,4], index: 1, kind: input, shape index: {}]   ;;  %s282_s2 = inlined_call_operand.vmem [shape: f32[32,1], index: 2, kind: input, shape index: {}]   ;;  %s283_s3 = inlined_call_operand.hbm [shape: f32[32,32], index: 3, kind: output, shape index: {}]  }
   0x1   :  { %v19_v0 = vld [vmem:[%s280_s0] sm:$0xf]  ;;  %v17_v2 = vld [vmem:[%s281_s1 + $0x10] sm:$0xff]  ;;  %v16_v3 = vld [vmem:[%s281_s1 + $0x8] sm:$0xff] }
   0x2   :  { %v15_v1 = vld [vmem:[%s281_s1] sm:$0xff]  ;;  %177 = vmatprep.subr.msk.mxu0 %vm57_vm0, %v19_v0  ;;  %185 = vmatprep.subr.msk.mxu1 %vm57_vm0, %v19_v0  ;;  %v18_v4 = vld [vmem:[%s281_s1 + $0x18] sm:$0xff]  ;;  %v22_v5 = vld [vmem:[%s282_s2 + $0x10] sm:$0xff] }
   0x3   :  { %178 = vmatpush3.msk.msra.mxu0 %vm57_vm0, %v19_v0  ;;  %186 = vmatpush3.msk.msra.mxu1 %vm57_vm0, %v19_v0  ;;  %v20_v6 = vld [vmem:[%s282_s2] sm:$0xff] }
   0x4   :  { %179 = vmatprep.mubr.msk.f32.mxu0 %vm44_vm1, %v15_v1  ;;  %182 = vmatprep.mubr.msk.f32.mxu1 %vm44_vm1, %v17_v2 }
   0x5   :  { %8 = vsyncpa [#allocation3], 0  ;;  %180 = vmatmul.mubr.msk.f32.vlgmr.msra.gmra.mrb[0].mxu0 %vm44_vm1, %v16_v3  ;;  %183 = vmatmul.mubr.msk.f32.vlgmr.msra.gmra.mrb[0].mxu1 %vm44_vm1, %v18_v4  ;;  %v217_v7 = vmov 0   ;;  %v23_v8 = vld [vmem:[%s282_s2 + $0x18] sm:$0xff]  ;;  %v21_v9 = vld [vmem:[%s282_s2 + $0x8] sm:$0xff]  ;;  %s218_s28 = smov [#allocation2]  }
   0x6   :  { %192 = vset.pattern.permute.xlu1 %v217_v7  ;;  %191 = vset.pattern.permute.xlu0 %v217_v7  ;;  %s156_s29 = sshll.u32 %s218_s28, 4  ;;  %vm146_vm2 = vcmask 261120   ;;  %s157_s29 = int_to_ptr.vmem [resolvable:$true] %s156_s29 }
   0x7   :  { %36 = vperm.xlu1 %192, %v22_v5   ;;  %26 = vperm.xlu0 %191, %v20_v6   ;;  %s193_s2 = scalar_lea.vmem %s157_s29, 512  ;;  %p198_p1 = scmp.lt.s32.totalorder %s157_s29, %s157_s29 }
   0x8   :  { %p194_p0 = scmp.ne.s32.totalorder %s157_s29, %s193_s2  ;;  %p199_p2 = scmp.lt.s32.totalorder %s193_s2, %s193_s2 }
   0xa   :  { %p200_p3 = por %p199_p2, %p198_p1 }
   0xb   :  { %41 = vperm.xlu1 %192, %v23_v8   ;;  %31 = vperm.xlu0 %191, %v21_v9  }
   0xc   :  { %p201_p4 = pnand %p200_p3, %p194_p0 }
  0x86   :  { %v37_v10 = vpop.permute.xlu1 %36  ;;  %v27_v11 = vpop.permute.xlu0 %26 }
  0x8a   :  { %v42_v12 = vpop.permute.xlu1 %41  ;;  %v32_v13 = vpop.permute.xlu0 %31 }
  0xd8   :  { %v181_v14 = vpop.f32.mrb[0].mxu0  ;;  %v184_v15 = vpop.f32.mrb[0].mxu1 }
  0xd9   :  { %v133_v16 = vadd.f32 %v181_v14, %v32_v13  ;;  %v143_v17 = vadd.f32 %v184_v15, %v42_v12  ;;  %v127_v18 = vpop.f32.mrb[1].mxu0  ;;  %v137_v19 = vpop.f32.mrb[1].mxu1 }
  0xda   :  { %v128_v20 = vadd.f32 %v127_v18, %v27_v11  ;;  %v138_v21 = vadd.f32 %v137_v19, %v37_v10 }
  0xdb   :  { %148 = vst.msk [vmem:[#allocation2 + $0x8] sm:$0xff] %vm146_vm2, %v133_v16  ;;  %150 = vst.msk [vmem:[#allocation2 + $0x18] sm:$0xff] %vm146_vm2, %v143_v17 }
  0xdc   :  { %147 = vst.msk [vmem:[#allocation2] sm:$0xff] %vm146_vm2, %v128_v20  ;;  %149 = vst.msk [vmem:[#allocation2 + $0x10] sm:$0xff] %vm146_vm2, %v138_v21 }
  0xdd   :  { %204 = shalt.err (!%p201_p4)
}
  0xde   :  { %s205_s5 = scalar_lea.hbm %s283_s3, 512 }
  0xdf   :  { %p206_p5 = scmp.ne.s32.totalorder %s283_s3, %s205_s5  ;;  %p209_p6 = scmp.lt.u32.totalorder %s205_s5, %s283_s3 }
  0xe1   :  { %p211_p7 = pnand %p209_p6, %p206_p5 }
  0xe3   :  { %214 = shalt.err (!%p211_p7)
}
  0xe4   :  { %s219_s10 = smov 128   ;;  %s220_s11 = smov 8  }
  0xe5   :  { %162 = dma.vmem_to_hbm [thread:$0]  %s157_s29, 512, %s283_s3, [#allocation3], %s219_s10, %s219_s10, %s220_s11  }
  0xe6   :  { %215 = dma.done.wait [#allocation3], 512  }
  0xe7   :  { %216 = vsyncadd [#allocation3], 4294966784 }
  0xe8   :  { %166 = vsyncpa [#allocation3], 1 }

</bundles_post_ra>
